<compile_context>
chip_gen: v7x
topology: tpu7x:2x2x1
jax: 0.10.0
libtpu: 0.0.40
codegen_flags: <defaults>
</compile_context>

<pallas_src>
import jax
import jax.numpy as jnp
from jax import lax
from jax.experimental import pallas as pl
from jax.experimental.pallas import tpu as pltpu

LANES = 128
SUBLANES = 8


def _ceil_to(a: int, m: int) -> int:
    return ((a + m - 1) // m) * m


def _auto_config():
    """(max_block_rows, num_core_splits, vmem_limit_bytes) tuned per chip."""
    # Safe-everywhere fallback: 4 MiB f32 input tiles, single split, 40 MiB limit.
    max_rows, splits, vmem_limit = 8192, 1, 40 * 1024 * 1024
    try:
        info = pltpu.get_tpu_info()
        vmem_cap = int(getattr(info, "vmem_capacity_bytes", 0))
        if vmem_cap >= 96 * 1024 * 1024:
            # v5e / v6e: 128 MiB VMEM, single TensorCore -> big tiles, no split.
            max_rows, splits, vmem_limit = 16384, 1, 64 * 1024 * 1024
        elif vmem_cap > 0:
            # v7x-class: 64 MiB VMEM per TC, 2 TCs -> 4 MiB tiles, 2-way split.
            max_rows, splits, vmem_limit = 8192, 2, 40 * 1024 * 1024
    except Exception:
        pass
    return max_rows, splits, vmem_limit


def _make_kernel(*, block_rows, rows, bpc, needs_mask):
    vreg_fold = (block_rows % SUBLANES) == 0

    def kernel(x_ref, t_ref, loss_ref, acc_ref):
        c = pl.program_id(0)          # core-split axis ("parallel")
        i = pl.program_id(1)          # reduction (chunk) axis ("arbitrary")

        @pl.when(i == 0)
        def _():
            acc_ref[...] = jnp.zeros_like(acc_ref)

        diff = x_ref[...].astype(jnp.float32) - t_ref[...].astype(jnp.float32)
        d2 = diff * diff

        if needs_mask:
            # Rows at/after `rows` are either undefined (ragged last block) or
            # duplicates from the clamped index map -> zero their contribution.
            row_start = (c * bpc + i) * block_rows
            row_ids = row_start + lax.broadcasted_iota(
                jnp.int32, (block_rows, LANES), 0)
            d2 = jnp.where(row_ids < rows, d2, 0.0)

        if vreg_fold:
            # Fold the whole tile into one (8,128) vreg: pure VALU adds, no XLU.
            acc_ref[...] += jnp.sum(
                d2.reshape(block_rows // SUBLANES, SUBLANES, LANES), axis=0)
        else:
            # Tiny single-block path (block_rows == rows, not a multiple of 8):
            # one small cross-sublane reduce, negligible.
            acc_ref[0:1, :] += jnp.sum(d2, axis=0, keepdims=True)

        @pl.when(i == pl.num_programs(1) - 1)
        def _():
            # One cross-lane/sublane reduce per core split, into SMEM.
            loss_ref[0, 0] = jnp.sum(acc_ref[...])

    return kernel


def content_loss_forward(x, target, *, max_block_rows=None, num_core_splits=None,
                         vmem_limit_bytes=None):
    """Returns (output, loss): output is `x` (pass-through), loss = mean((x-t)^2)."""
    assert x.shape == target.shape, "input/target shape mismatch"
    n_elems = int(x.size)
    if n_elems == 0:
        return x, jnp.float32(0.0)

    auto_rows, auto_splits, auto_vmem = _auto_config()
    max_block_rows = auto_rows if max_block_rows is None else max_block_rows
    num_core_splits = auto_splits if num_core_splits is None else num_core_splits
    vmem_limit_bytes = auto_vmem if vmem_limit_bytes is None else vmem_limit_bytes

    xf = x.reshape(-1)
    tf = target.reshape(-1)
    if n_elems % LANES != 0:
        # TODO(synk): rare lane-unaligned case still pays one HBM copy of each
        # operand for the minimal zero-pad (padded zeros contribute 0 to the
        # sum); lane-aligned inputs (the common case) take the copy-free path.
        padded = _ceil_to(n_elems, LANES)
        xf = jnp.pad(xf, (0, padded - n_elems))
        tf = jnp.pad(tf, (0, padded - n_elems))

    rows = int(xf.size) // LANES
    # Free bitcast reshapes (contiguous, row-major).
    x2 = xf.reshape(rows, LANES)
    t2 = tf.reshape(rows, LANES)

    # Tile selection: single full-extent block for small inputs (always a legal
    # block shape), otherwise the per-chip max tile (multiple of 32 rows).
    block_rows = rows if rows <= max_block_rows else max_block_rows

    t_blocks = -(-rows // block_rows)                      # cdiv
    nsplits = max(1, min(int(num_core_splits), t_blocks))
    bpc = -(-t_blocks // nsplits)                          # blocks per core split
    grid = (nsplits, bpc)
    needs_mask = (rows % block_rows != 0) or (t_blocks % nsplits != 0)

    def in_map(c, i):
        # Clamp so the DMA never targets a block past the array; logically
        # out-of-range positions are fully zeroed by the in-kernel row mask.
        return (jnp.minimum(c * bpc + i, t_blocks - 1), 0)

    kernel = _make_kernel(block_rows=block_rows, rows=rows, bpc=bpc,
                          needs_mask=needs_mask)

    bytes_accessed = n_elems * (jnp.dtype(x.dtype).itemsize
                                + jnp.dtype(target.dtype).itemsize) + 4 * nsplits

    partials = pl.pallas_call(
        kernel,
        out_shape=jax.ShapeDtypeStruct((nsplits, 1), jnp.float32),
        grid_spec=pltpu.PrefetchScalarGridSpec(
            num_scalar_prefetch=0,
            grid=grid,
            in_specs=[
                pl.BlockSpec((block_rows, LANES), in_map),
                pl.BlockSpec((block_rows, LANES), in_map),
            ],
            out_specs=pl.BlockSpec((1, 1), lambda c, i: (c, 0),
                                   memory_space=pltpu.SMEM),
            scratch_shapes=[pltpu.VMEM((SUBLANES, LANES), jnp.float32)],
        ),
        compiler_params=pltpu.CompilerParams(
            dimension_semantics=("parallel", "arbitrary"),
            vmem_limit_bytes=vmem_limit_bytes,
        ),
        cost_estimate=pl.CostEstimate(
            flops=3 * n_elems,
            transcendentals=0,
            bytes_accessed=bytes_accessed,
        ),
    )(x2, t2)

    # Mean over the TRUE element count (padding / masked rows contribute 0).
    loss = jnp.sum(partials) * jnp.float32(1.0 / n_elems)
    # Pass-through: module returns its input unchanged; returning `x` itself is
    # exact and costs zero HBM traffic.
    return x, loss


if __name__ == "__main__":
    # Small NCHW shapes consistent with the module's forward.
    B, C, H, W = 2, 4, 16, 16
    key = jax.random.PRNGKey(0)
    kx, kt = jax.random.split(key)
    x = jax.random.normal(kx, (B, C, H, W), dtype=jnp.float32)
    # "target" plays the role of the detached target feature map from __init__.
    target = jax.random.normal(kt, (B, C, H, W), dtype=jnp.float32)

    out, loss = content_loss_forward(x, target)
    out = jax.block_until_ready(out)
    loss = jax.block_until_ready(loss)

    ref_loss = jnp.mean((x - target) ** 2)
    assert out.shape == x.shape and bool(jnp.array_equal(out, x)), \
        "pass-through output mismatch"
    assert jnp.allclose(loss, ref_loss, rtol=1e-5, atol=1e-6), \
        f"loss mismatch: {loss} vs {ref_loss}"

    # Ragged element count (not divisible by 128): exercises the minimal-pad
    # fallback path.
    x3 = jax.random.normal(kx, (2, 3, 17, 19), dtype=jnp.float32)
    t3 = jax.random.normal(kt, (2, 3, 17, 19), dtype=jnp.float32)
    _, loss3 = content_loss_forward(x3, t3)
    loss3 = jax.block_until_ready(loss3)
    ref3 = jnp.mean((x3 - t3) ** 2)
    assert jnp.allclose(loss3, ref3, rtol=1e-5, atol=1e-6), \
        f"ragged loss mismatch: {loss3} vs {ref3}"

    # Multi-block grid with a partial last block and a 2-way core split at a
    # tiny size: exercises the in-kernel row mask and the clamped index map.
    x4 = jax.random.normal(kx, (20, 128), dtype=jnp.float32)
    t4 = jax.random.normal(kt, (20, 128), dtype=jnp.float32)
    _, loss4 = content_loss_forward(x4, t4, max_block_rows=8, num_core_splits=2)
    loss4 = jax.block_until_ready(loss4)
    ref4 = jnp.mean((x4 - t4) ** 2)
    assert jnp.allclose(loss4, ref4, rtol=1e-5, atol=1e-6), \
        f"masked-tail loss mismatch: {loss4} vs {ref4}"

    print("KERNEL_OK")
</pallas_src>

<mosaic_0001>
module attributes {stable_mosaic.version = 11 : i64} {
  func.func @kernel(%arg0: i32, %arg1: i32, %arg2: memref<16x128xf32, #tpu.memory_space<vmem>>, %arg3: memref<16x128xf32, #tpu.memory_space<vmem>>, %arg4: memref<1x1xf32, #tpu.memory_space<smem>>, %arg5: memref<8x128xf32, #tpu.memory_space<vmem>>) attributes {dimension_semantics = [#tpu.dimension_semantics<parallel>, #tpu.dimension_semantics<arbitrary>], iteration_bounds = array<i64: 1, 1>, scalar_prefetch = 0 : i64, scratch_operands = 1 : i64, tpu.core_type = #tpu.core_type<tc>, window_params = [{transform_indices = @transform_0, window_bounds = array<i64: 16, 128>}, {transform_indices = @transform_1, window_bounds = array<i64: 16, 128>}, {transform_indices = @transform_2, window_bounds = array<i64: 1, 1>}]} {
    %c0_i32 = arith.constant 0 : i32
    %0 = arith.cmpi eq, %arg1, %c0_i32 : i32
    %1 = arith.extui %0 : i1 to i32
    %c0_i32_0 = arith.constant 0 : i32
    %2 = arith.cmpi ne, %1, %c0_i32_0 : i32
    scf.if %2 {
      %cst_10 = arith.constant 0.000000e+00 : f32
      %15 = vector.broadcast %cst_10 : f32 to vector<8x128xf32>
      %c0_11 = arith.constant 0 : index
      %c0_12 = arith.constant 0 : index
      %16 = vector.load %arg5[%c0_11, %c0_12] : memref<8x128xf32, #tpu.memory_space<vmem>>, vector<8x128xf32>
      tpu.vector_store %arg5[%c0_11, %c0_12], %15 {strides = array<i32>} : memref<8x128xf32, #tpu.memory_space<vmem>>, vector<8x128xf32>,
    } else {
    }
    %c0 = arith.constant 0 : index
    %c0_1 = arith.constant 0 : index
    %3 = vector.load %arg2[%c0, %c0_1] : memref<16x128xf32, #tpu.memory_space<vmem>>, vector<16x128xf32>
    %c0_2 = arith.constant 0 : index
    %c0_3 = arith.constant 0 : index
    %4 = vector.load %arg3[%c0_2, %c0_3] : memref<16x128xf32, #tpu.memory_space<vmem>>, vector<16x128xf32>
    %5 = arith.subf %3, %4 : vector<16x128xf32>
    %6 = arith.mulf %5, %5 : vector<16x128xf32>
    %c0_4 = arith.constant 0 : index
    %c0_5 = arith.constant 0 : index
    %7 = vector.load %arg5[%c0_4, %c0_5] : memref<8x128xf32, #tpu.memory_space<vmem>>, vector<8x128xf32>
    %8 = vector.shape_cast %6 : vector<16x128xf32> to vector<2x8x128xf32>
    %cst = arith.constant dense<0.000000e+00> : vector<8x128xf32>
    %9 = vector.multi_reduction <add>, %8, %cst [0] : vector<2x8x128xf32> to vector<8x128xf32>
    %10 = arith.addf %7, %9 : vector<8x128xf32>
    %c0_6 = arith.constant 0 : index
    %c0_7 = arith.constant 0 : index
    %11 = vector.load %arg5[%c0_6, %c0_7] : memref<8x128xf32, #tpu.memory_space<vmem>>, vector<8x128xf32>
    tpu.vector_store %arg5[%c0_6, %c0_7], %10 {strides = array<i32>} : memref<8x128xf32, #tpu.memory_space<vmem>>, vector<8x128xf32>,
    %c0_i32_8 = arith.constant 0 : i32
    %12 = arith.cmpi eq, %arg1, %c0_i32_8 : i32
    %13 = arith.extui %12 : i1 to i32
    %c0_i32_9 = arith.constant 0 : i32
    %14 = arith.cmpi ne, %13, %c0_i32_9 : i32
    scf.if %14 {
      %c0_10 = arith.constant 0 : index
      %c0_11 = arith.constant 0 : index
      %15 = vector.load %arg5[%c0_10, %c0_11] : memref<8x128xf32, #tpu.memory_space<vmem>>, vector<8x128xf32>
      %16 = vector.shape_cast %15 : vector<8x128xf32> to vector<1x8x128xf32>
      %cst_12 = arith.constant dense<0.000000e+00> : vector<1xf32>
      %17 = vector.multi_reduction <add>, %16, %cst_12 [1, 2] : vector<1x8x128xf32> to vector<1xf32>
      %18 = vector.shape_cast %17 : vector<1xf32> to vector<1x1x1xf32>
      %19 = vector.extract %18[0, 0, 0] : f32 from vector<1x1x1xf32>
      %c0_13 = arith.constant 0 : index
      %c0_14 = arith.constant 0 : index
      %20 = memref.load %arg4[%c0_13, %c0_14] : memref<1x1xf32, #tpu.memory_space<smem>>
      memref.store %19, %arg4[%c0_13, %c0_14] : memref<1x1xf32, #tpu.memory_space<smem>>
    } else {
    }
    return
  }
  func.func @transform_0(%arg0: i32, %arg1: i32) -> (i32, i32) {
    %c1_i32 = arith.constant 1 : i32
    %0 = arith.muli %arg0, %c1_i32 : i32
    %1 = arith.addi %0, %arg1 : i32
    %c0_i32 = arith.constant 0 : i32
    %2 = arith.minsi %1, %c0_i32 : i32
    %c0_i32_0 = arith.constant 0 : i32
    %c0_i32_1 = arith.constant 0 : i32
    return %2, %c0_i32_0 : i32, i32
  }
  func.func @transform_1(%arg0: i32, %arg1: i32) -> (i32, i32) {
    %c1_i32 = arith.constant 1 : i32
    %0 = arith.muli %arg0, %c1_i32 : i32
    %1 = arith.addi %0, %arg1 : i32
    %c0_i32 = arith.constant 0 : i32
    %2 = arith.minsi %1, %c0_i32 : i32
    %c0_i32_0 = arith.constant 0 : i32
    %c0_i32_1 = arith.constant 0 : i32
    return %2, %c0_i32_0 : i32, i32
  }
  func.func @transform_2(%arg0: i32, %arg1: i32) -> (i32, i32) {
    %c0_i32 = arith.constant 0 : i32
    %c0_i32_0 = arith.constant 0 : i32
    return %arg0, %c0_i32 : i32, i32
  }
}

</mosaic_0001>

<bundles_post_ra>
// kernel: tpu_custom_call.1
= control target key start
LH: loop header
LB: loop body
LE: loop exit
PB: predicated region body
PF: predicated region fallthrough
CT: control target
= control target key end

     0   :  { %7 = vsyncpa [#allocation4], 0  ;;  %s234_s0 = inlined_call_operand.hbm [shape: f32[16,128], index: 0, kind: input, shape index: {}]   ;;  %s235_s1 = inlined_call_operand.hbm [shape: f32[16,128], index: 1, kind: input, shape index: {}]   ;;  %s236_s2 = inlined_call_operand.hbm [shape: f32[1,1], index: 2, kind: output, shape index: {}]  }
   0x1   :  { %8 = vsyncpa [#allocation7], 0 }
   0x2   :  { %9 = vsyncpa [#allocation5], 0  ;;  %s178_s9 = smov [#allocation3]   ;;  %s118_s13 = scalar_lea.hbm %s234_s0, 256 }
   0x3   :  { %s21_s10 = sshll.u32 %s178_s9, 4  ;;  %p119_p0 = scmp.ne.s32.totalorder %s234_s0, %s118_s13  ;;  %s22_s10 = int_to_ptr.vmem [resolvable:$true] %s21_s10 }
   0x4   :  { %p122_p1 = scmp.lt.u32.totalorder %s118_s13, %s234_s0 }
   0x6   :  { %p124_p2 = pnand %p122_p1, %p119_p0 }
   0x8   :  { %127 = shalt.err (!%p124_p2)
}
   0x9   :  { %s128_s18 = scalar_lea.vmem %s22_s10, 256  ;;  %p133_p4 = scmp.lt.s32.totalorder %s22_s10, %s22_s10 }
   0xa   :  { %p129_p3 = scmp.ne.s32.totalorder %s22_s10, %s128_s18  ;;  %p134_p5 = scmp.lt.s32.totalorder %s128_s18, %s128_s18 }
   0xc   :  { %p135_p6 = por %p134_p5, %p133_p4 }
   0xe   :  { %p136_p7 = pnand %p135_p6, %p129_p3 }
  0x10   :  { %139 = shalt.err (!%p136_p7)
}
  0x11   :  { %s179_s19 = smov 128   ;;  %s180_s20 = smov 8  }
  0x12   :  { %27 = dma.hbm_to_vmem [thread:$0]  %s234_s0, 256, %s22_s10, [#allocation4], %s179_s19, %s179_s19, %s180_s20  }
  0x13   :  { %s181_s23 = smov [#allocation6]   ;;  %s140_s27 = scalar_lea.hbm %s235_s1, 256 }
  0x14   :  { %s39_s24 = sshll.u32 %s181_s23, 4  ;;  %p141_p8 = scmp.ne.s32.totalorder %s235_s1, %s140_s27  ;;  %s40_s24 = int_to_ptr.vmem [resolvable:$true] %s39_s24 }
  0x15   :  { %p144_p9 = scmp.lt.u32.totalorder %s140_s27, %s235_s1 }
  0x17   :  { %p146_p10 = pnand %p144_p9, %p141_p8 }
  0x19   :  { %149 = shalt.err (!%p146_p10)
}
  0x1a   :  { %s150_s4 = scalar_lea.vmem %s40_s24, 256  ;;  %p155_p12 = scmp.lt.s32.totalorder %s40_s24, %s40_s24 }
  0x1b   :  { %p151_p11 = scmp.ne.s32.totalorder %s40_s24, %s150_s4  ;;  %p156_p13 = scmp.lt.s32.totalorder %s150_s4, %s150_s4 }
  0x1d   :  { %p157_p0 = por %p156_p13, %p155_p12 }
  0x1f   :  { %p158_p1 = pnand %p157_p0, %p151_p11 }
  0x21   :  { %161 = shalt.err (!%p158_p1)
}
  0x22   :  { %45 = dma.hbm_to_vmem [thread:$0]  %s235_s1, 256, %s40_s24, [#allocation7], %s179_s19, %s179_s19, %s180_s20  }
  0x23   :  { %172 = dma.done.wait [#allocation4], 256  }
  0x24   :  { %173 = vsyncadd [#allocation4], 4294967040 }
  0x25   :  { %174 = dma.done.wait [#allocation7], 256  }
  0x26   :  { %175 = vsyncadd [#allocation7], 4294967040  ;;  %v65_v0 = vld [vmem:[#allocation3] sm:$0xff]  ;;  %v66_v1 = vld [vmem:[#allocation3 + $0x8] sm:$0xff]  ;;  %s162_s8 = scalar_lea.hbm %s236_s2, 16 }
  0x27   :  { %v67_v2 = vld [vmem:[#allocation6] sm:$0xff]  ;;  %v68_v3 = vld [vmem:[#allocation6 + $0x8] sm:$0xff]  ;;  %p163_p2 = scmp.ne.s32.totalorder %s236_s2, %s162_s8  ;;  %p166_p3 = scmp.lt.u32.totalorder %s162_s8, %s236_s2 }
  0x28   :  { %v69_v4 = vsub.f32 %v65_v0, %v67_v2  ;;  %v70_v5 = vsub.f32 %v66_v1, %v68_v3 }
  0x29   :  { %p168_p4 = pnand %p166_p3, %p163_p2 }
  0x2a   :  { %v71_v6 = vmul.f32 %v69_v4, %v69_v4  ;;  %v72_v7 = vmul.f32 %v70_v5, %v70_v5 }
  0x2c   :  { %v74_v8 = vadd.f32 %v72_v7, %v71_v6 }
  0x2e   :  { %81 = vadd.xlane.f32.xlu0 %v74_v8 }
  0xbb   :  { %v82_v9 = vpop.xlane.xlu0 %81 }
  0xbc   :  { %v83_v10 = vrot.slane %v82_v9, 4 }
  0xbe   :  { %v84_v11 = vadd.f32 %v83_v10, %v82_v9 }
  0xc0   :  { %v85_v12 = vrot.slane %v84_v11, 2 }
  0xc2   :  { %v86_v13 = vadd.f32 %v85_v12, %v84_v11 }
  0xc4   :  { %v87_v14 = vrot.slane %v86_v13, 1 }
  0xc6   :  { %v88_v15 = vadd.f32 %v87_v14, %v86_v13 }
  0xc8   :  { %111 = vpush %v88_v15 }
  0xf9   :  { %s112_s1 = spop %111 }
  0xfa   :  { %91 = sst [smem:[#allocation8]] %s112_s1 }
  0xfb   :  { %171 = shalt.err (!%p168_p4)
}
  0xfc   :  { %s182_s13 = smov [#allocation8]  }
  0xfd   :  { %99 = dma.smem_to_hbm %s182_s13, 16, %s236_s2, [#allocation5]  }
  0xfe   :  { %176 = dma.done.wait [#allocation5], 16  }
  0xff   :  { %177 = vsyncadd [#allocation5], 4294967280 }
 0x100   :  { %103 = sfence }
 0x101   :  { %104 = vsyncpa [#allocation4], 1 }
 0x102   :  { %105 = vsyncpa [#allocation7], 1 }
 0x103   :  { %106 = vsyncpa [#allocation5], 1 }

</bundles_post_ra>
